<compile_context>
chip_gen: v7x
topology: tpu7x:2x2x1
jax: 0.10.0
libtpu: 0.0.40
codegen_flags: <defaults>
</compile_context>

<pallas_src>
import jax
import jax.numpy as jnp
from jax.experimental import pallas as pl
from jax.experimental.pallas import tpu as pltpu

HIDDEN = (22, 11, 22, 44)   # fixed by the PyTorch module


def _round_up(x, m):
    return ((x + m - 1) // m) * m


def _dqn_kernel(x_ref, w_ref, b_ref, o_ref):
    """One batch tile: 5 x (W @ h + b, ReLU); all feature dims padded to F."""
    h = x_ref[...]                                     # (F, TB) bf16
    acc = None
    for layer in range(w_ref.shape[0]):                # static unroll, 5 layers
        acc = jnp.dot(w_ref[layer], h,                 # (F,F)@(F,TB) on the MXU
                      preferred_element_type=jnp.float32)
        acc = jnp.maximum(acc + b_ref[layer], 0.0)     # f32 bias-add + ReLU
        h = acc.astype(jnp.bfloat16)                   # bf16 feed for next layer
    # Padded rows of the last layer are exactly 0 (zero weight rows + zero bias).
    o_ref[...] = acc[:o_ref.shape[0], :].astype(o_ref.dtype)


def init_dqn_params(key, state_dim, action_dim):
    """nn.Linear-style init: W (out, in), b (out,), U(-1/sqrt(in), 1/sqrt(in))."""
    dims = (state_dim,) + HIDDEN + (action_dim,)
    params = []
    for i in range(len(dims) - 1):
        fan_in, fan_out = dims[i], dims[i + 1]
        key, kw, kb = jax.random.split(key, 3)
        bound = float(1.0 / (fan_in ** 0.5))
        w = jax.random.uniform(kw, (fan_out, fan_in), jnp.float32, -bound, bound)
        b = jax.random.uniform(kb, (fan_out,), jnp.float32, -bound, bound)
        params.append((w, b))
    return params


def _pack_params(params, feat):
    """Pack all layers into one zero-padded weight slab and one bias slab."""
    n_layers = len(params)
    w_slab = jnp.zeros((n_layers, feat, feat), jnp.float32)
    b_slab = jnp.zeros((n_layers, feat, 1), jnp.float32)
    for i, (w, b) in enumerate(params):
        out_d, in_d = w.shape
        w_slab = w_slab.at[i, :out_d, :in_d].set(w)
        b_slab = b_slab.at[i, :out_d, 0].set(b)
    return w_slab.astype(jnp.bfloat16), b_slab       # bf16 weights, f32 bias


def dqn_forward(x, params, *, batch_tile=512):
    """x: (B, state_dim) f32 -> (B, action_dim) f32."""
    B, state_dim = x.shape
    action_dim = params[-1][0].shape[0]
    n_layers = len(params)

    feat_dims = [state_dim] + [w.shape[0] for w, _ in params]
    F = max(8, _round_up(max(feat_dims), 8))          # padded feature width (48)
    A_pad = _round_up(action_dim, 8)                  # padded output rows

    # Batch sits on the lane axis: pad to 128 and pick the batch tile.
    b128 = _round_up(B, 128)
    TB = b128 if b128 <= batch_tile else batch_tile
    B_pad = _round_up(B, TB)
    grid = (pl.cdiv(B_pad, TB),)

    w_slab, b_slab = _pack_params(params, F)

    # (B, state_dim) -> lane-dense (F, B_pad), zero-padded, bf16 for the MXU.
    xt = jnp.zeros((F, B_pad), jnp.float32).at[:state_dim, :B].set(x.T)
    xt = xt.astype(jnp.bfloat16)

    out = pl.pallas_call(
        _dqn_kernel,
        out_shape=jax.ShapeDtypeStruct((A_pad, B_pad), jnp.float32),
        grid=grid,
        in_specs=[
            pl.BlockSpec((F, TB), lambda i: (0, i)),           # x: pipelined
            pl.BlockSpec((n_layers, F, F), lambda i: (0, 0, 0)),  # weights: resident
            pl.BlockSpec((n_layers, F, 1), lambda i: (0, 0, 0)),  # biases: resident
        ],
        out_specs=pl.BlockSpec((A_pad, TB), lambda i: (0, i)),
        compiler_params=pltpu.CompilerParams(
            dimension_semantics=("parallel",),                 # megacore on v7x
            vmem_limit_bytes=32 * 1024 * 1024,                 # safe on v5e/v6e/v7x
        ),
    )(xt, w_slab, b_slab)

    return out[:action_dim, :B].T


def dqn_reference_bf16(x, params):
    """Pure-JAX reference with the same bf16-matmul / f32-accumulate numerics."""
    h = x.astype(jnp.bfloat16)
    y = None
    for w, b in params:
        y = jnp.dot(h, w.astype(jnp.bfloat16).T,
                    preferred_element_type=jnp.float32) + b
        y = jnp.maximum(y, 0.0)
        h = y.astype(jnp.bfloat16)
    return y


def dqn_reference_f32(x, params):
    """Full-precision reference of the original module semantics."""
    h = x
    for w, b in params:
        h = jnp.maximum(h @ w.T + b, 0.0)
    return h


if __name__ == "__main__":
    key = jax.random.PRNGKey(0)
    k_x, k_p = jax.random.split(key)

    B, state_dim, action_dim = 2, 8, 4
    x = jax.random.normal(k_x, (B, state_dim), dtype=jnp.float32)
    params = init_dqn_params(k_p, state_dim, action_dim)

    out = jax.block_until_ready(dqn_forward(x, params))
    assert out.shape == (B, action_dim)

    ref_bf16 = dqn_reference_bf16(x, params)
    ref_f32 = dqn_reference_f32(x, params)
    assert jnp.allclose(out, ref_bf16, atol=1e-4, rtol=1e-4), "mismatch vs bf16 reference"
    assert jnp.allclose(out, ref_f32, atol=5e-2, rtol=5e-2), "mismatch vs f32 reference"

    print("KERNEL_OK")
</pallas_src>

<mosaic_0001>
module attributes {stable_mosaic.version = 11 : i64} {
  func.func @_dqn_kernel(%arg0: i32, %arg1: memref<48x128xbf16, #tpu.memory_space<vmem>>, %arg2: memref<5x48x48xbf16, #tpu.memory_space<vmem>>, %arg3: memref<5x48x1xf32, #tpu.memory_space<vmem>>, %arg4: memref<8x128xf32, #tpu.memory_space<vmem>>) attributes {dimension_semantics = [#tpu.dimension_semantics<parallel>], iteration_bounds = array<i64: 1>, scalar_prefetch = 0 : i64, scratch_operands = 0 : i64, tpu.core_type = #tpu.core_type<tc>, window_params = [{transform_indices = @transform_0, window_bounds = array<i64: 48, 128>}, {pipeline_mode = #tpu.pipeline_mode<synchronous>, transform_indices = @transform_1, window_bounds = array<i64: 5, 48, 48>}, {pipeline_mode = #tpu.pipeline_mode<synchronous>, transform_indices = @transform_2, window_bounds = array<i64: 5, 48, 1>}, {transform_indices = @transform_3, window_bounds = array<i64: 8, 128>}]} {
    %c0 = arith.constant 0 : index
    %c0_0 = arith.constant 0 : index
    %0 = vector.load %arg1[%c0, %c0_0] : memref<48x128xbf16, #tpu.memory_space<vmem>>, vector<48x128xbf16>
    %c0_1 = arith.constant 0 : index
    %c0_2 = arith.constant 0 : index
    %c0_3 = arith.constant 0 : index
    %1 = vector.load %arg2[%c0_1, %c0_2, %c0_3] : memref<5x48x48xbf16, #tpu.memory_space<vmem>>, vector<1x48x48xbf16>
    %2 = vector.shape_cast %1 : vector<1x48x48xbf16> to vector<48x48xbf16>
    %cst = arith.constant dense<0.000000e+00> : vector<48x128xf32>
    %3 = tpu.matmul %2, %0, %cst {dimension_numbers = #tpu.dot_dimension_numbers<[1], [0], [0], [1], [0, 0, 1, 1], [], []>} : vector<48x48xbf16>, vector<48x128xbf16>, vector<48x128xf32> -> vector<48x128xf32>
    %c0_4 = arith.constant 0 : index
    %c0_5 = arith.constant 0 : index
    %c0_6 = arith.constant 0 : index
    %4 = vector.load %arg3[%c0_4, %c0_5, %c0_6] : memref<5x48x1xf32, #tpu.memory_space<vmem>>, vector<1x48x1xf32>
    %5 = vector.shape_cast %4 : vector<1x48x1xf32> to vector<48x1xf32>
    %6 = vector.broadcast %5 : vector<48x1xf32> to vector<48x128xf32>
    %7 = arith.addf %3, %6 : vector<48x128xf32>
    %cst_7 = arith.constant 0.000000e+00 : f32
    %8 = vector.broadcast %cst_7 : f32 to vector<48x128xf32>
    %9 = arith.maximumf %7, %8 : vector<48x128xf32>
    %10 = arith.truncf %9 : vector<48x128xf32> to vector<48x128xbf16>
    %c1 = arith.constant 1 : index
    %c0_8 = arith.constant 0 : index
    %c0_9 = arith.constant 0 : index
    %11 = vector.load %arg2[%c1, %c0_8, %c0_9] : memref<5x48x48xbf16, #tpu.memory_space<vmem>>, vector<1x48x48xbf16>
    %12 = vector.shape_cast %11 : vector<1x48x48xbf16> to vector<48x48xbf16>
    %cst_10 = arith.constant dense<0.000000e+00> : vector<48x128xf32>
    %13 = tpu.matmul %12, %10, %cst_10 {dimension_numbers = #tpu.dot_dimension_numbers<[1], [0], [0], [1], [0, 0, 1, 1], [], []>} : vector<48x48xbf16>, vector<48x128xbf16>, vector<48x128xf32> -> vector<48x128xf32>
    %c1_11 = arith.constant 1 : index
    %c0_12 = arith.constant 0 : index
    %c0_13 = arith.constant 0 : index
    %14 = vector.load %arg3[%c1_11, %c0_12, %c0_13] : memref<5x48x1xf32, #tpu.memory_space<vmem>>, vector<1x48x1xf32>
    %15 = vector.shape_cast %14 : vector<1x48x1xf32> to vector<48x1xf32>
    %16 = vector.broadcast %15 : vector<48x1xf32> to vector<48x128xf32>
    %17 = arith.addf %13, %16 : vector<48x128xf32>
    %cst_14 = arith.constant 0.000000e+00 : f32
    %18 = vector.broadcast %cst_14 : f32 to vector<48x128xf32>
    %19 = arith.maximumf %17, %18 : vector<48x128xf32>
    %20 = arith.truncf %19 : vector<48x128xf32> to vector<48x128xbf16>
    %c2 = arith.constant 2 : index
    %c0_15 = arith.constant 0 : index
    %c0_16 = arith.constant 0 : index
    %21 = vector.load %arg2[%c2, %c0_15, %c0_16] : memref<5x48x48xbf16, #tpu.memory_space<vmem>>, vector<1x48x48xbf16>
    %22 = vector.shape_cast %21 : vector<1x48x48xbf16> to vector<48x48xbf16>
    %cst_17 = arith.constant dense<0.000000e+00> : vector<48x128xf32>
    %23 = tpu.matmul %22, %20, %cst_17 {dimension_numbers = #tpu.dot_dimension_numbers<[1], [0], [0], [1], [0, 0, 1, 1], [], []>} : vector<48x48xbf16>, vector<48x128xbf16>, vector<48x128xf32> -> vector<48x128xf32>
    %c2_18 = arith.constant 2 : index
    %c0_19 = arith.constant 0 : index
    %c0_20 = arith.constant 0 : index
    %24 = vector.load %arg3[%c2_18, %c0_19, %c0_20] : memref<5x48x1xf32, #tpu.memory_space<vmem>>, vector<1x48x1xf32>
    %25 = vector.shape_cast %24 : vector<1x48x1xf32> to vector<48x1xf32>
    %26 = vector.broadcast %25 : vector<48x1xf32> to vector<48x128xf32>
    %27 = arith.addf %23, %26 : vector<48x128xf32>
    %cst_21 = arith.constant 0.000000e+00 : f32
    %28 = vector.broadcast %cst_21 : f32 to vector<48x128xf32>
    %29 = arith.maximumf %27, %28 : vector<48x128xf32>
    %30 = arith.truncf %29 : vector<48x128xf32> to vector<48x128xbf16>
    %c3 = arith.constant 3 : index
    %c0_22 = arith.constant 0 : index
    %c0_23 = arith.constant 0 : index
    %31 = vector.load %arg2[%c3, %c0_22, %c0_23] : memref<5x48x48xbf16, #tpu.memory_space<vmem>>, vector<1x48x48xbf16>
    %32 = vector.shape_cast %31 : vector<1x48x48xbf16> to vector<48x48xbf16>
    %cst_24 = arith.constant dense<0.000000e+00> : vector<48x128xf32>
    %33 = tpu.matmul %32, %30, %cst_24 {dimension_numbers = #tpu.dot_dimension_numbers<[1], [0], [0], [1], [0, 0, 1, 1], [], []>} : vector<48x48xbf16>, vector<48x128xbf16>, vector<48x128xf32> -> vector<48x128xf32>
    %c3_25 = arith.constant 3 : index
    %c0_26 = arith.constant 0 : index
    %c0_27 = arith.constant 0 : index
    %34 = vector.load %arg3[%c3_25, %c0_26, %c0_27] : memref<5x48x1xf32, #tpu.memory_space<vmem>>, vector<1x48x1xf32>
    %35 = vector.shape_cast %34 : vector<1x48x1xf32> to vector<48x1xf32>
    %36 = vector.broadcast %35 : vector<48x1xf32> to vector<48x128xf32>
    %37 = arith.addf %33, %36 : vector<48x128xf32>
    %cst_28 = arith.constant 0.000000e+00 : f32
    %38 = vector.broadcast %cst_28 : f32 to vector<48x128xf32>
    %39 = arith.maximumf %37, %38 : vector<48x128xf32>
    %40 = arith.truncf %39 : vector<48x128xf32> to vector<48x128xbf16>
    %c4 = arith.constant 4 : index
    %c0_29 = arith.constant 0 : index
    %c0_30 = arith.constant 0 : index
    %41 = vector.load %arg2[%c4, %c0_29, %c0_30] : memref<5x48x48xbf16, #tpu.memory_space<vmem>>, vector<1x48x48xbf16>
    %42 = vector.shape_cast %41 : vector<1x48x48xbf16> to vector<48x48xbf16>
    %cst_31 = arith.constant dense<0.000000e+00> : vector<48x128xf32>
    %43 = tpu.matmul %42, %40, %cst_31 {dimension_numbers = #tpu.dot_dimension_numbers<[1], [0], [0], [1], [0, 0, 1, 1], [], []>} : vector<48x48xbf16>, vector<48x128xbf16>, vector<48x128xf32> -> vector<48x128xf32>
    %c4_32 = arith.constant 4 : index
    %c0_33 = arith.constant 0 : index
    %c0_34 = arith.constant 0 : index
    %44 = vector.load %arg3[%c4_32, %c0_33, %c0_34] : memref<5x48x1xf32, #tpu.memory_space<vmem>>, vector<1x48x1xf32>
    %45 = vector.shape_cast %44 : vector<1x48x1xf32> to vector<48x1xf32>
    %46 = vector.broadcast %45 : vector<48x1xf32> to vector<48x128xf32>
    %47 = arith.addf %43, %46 : vector<48x128xf32>
    %cst_35 = arith.constant 0.000000e+00 : f32
    %48 = vector.broadcast %cst_35 : f32 to vector<48x128xf32>
    %49 = arith.maximumf %47, %48 : vector<48x128xf32>
    %50 = vector.extract_strided_slice %49 {offsets = [0, 0], sizes = [8, 128], strides = [1, 1]} : vector<48x128xf32> to vector<8x128xf32>
    %c0_36 = arith.constant 0 : index
    %c0_37 = arith.constant 0 : index
    %51 = vector.load %arg4[%c0_36, %c0_37] : memref<8x128xf32, #tpu.memory_space<vmem>>, vector<8x128xf32>
    tpu.vector_store %arg4[%c0_36, %c0_37], %50 {strides = array<i32>} : memref<8x128xf32, #tpu.memory_space<vmem>>, vector<8x128xf32>,
    return
  }
  func.func @transform_0(%arg0: i32) -> (i32, i32) {
    %c0_i32 = arith.constant 0 : i32
    %c0_i32_0 = arith.constant 0 : i32
    return %c0_i32, %arg0 : i32, i32
  }
  func.func @transform_1(%arg0: i32) -> (i32, i32, i32) {
    %c0_i32 = arith.constant 0 : i32
    %c0_i32_0 = arith.constant 0 : i32
    %c0_i32_1 = arith.constant 0 : i32
    %c0_i32_2 = arith.constant 0 : i32
    return %c0_i32, %c0_i32_0, %c0_i32_1 : i32, i32, i32
  }
  func.func @transform_2(%arg0: i32) -> (i32, i32, i32) {
    %c0_i32 = arith.constant 0 : i32
    %c0_i32_0 = arith.constant 0 : i32
    %c0_i32_1 = arith.constant 0 : i32
    %c0_i32_2 = arith.constant 0 : i32
    return %c0_i32, %c0_i32_0, %c0_i32_1 : i32, i32, i32
  }
  func.func @transform_3(%arg0: i32) -> (i32, i32) {
    %c0_i32 = arith.constant 0 : i32
    %c0_i32_0 = arith.constant 0 : i32
    return %c0_i32, %arg0 : i32, i32
  }
}

</mosaic_0001>

<bundles_post_ra>
// kernel: tpu_custom_call.1
= control target key start
LH: loop header
LB: loop body
LE: loop exit
PB: predicated region body
PF: predicated region fallthrough
CT: control target
= control target key end

     0   :  { %v961_v1 = vmov 0.0   ;;  %vm962_vm0 = vmmov 0   ;;  %v963_v3 = vmov 0   ;;  %vm97_vm1 = vcmask 392192   ;;  %s1189_s0 = inlined_call_operand.vmem [shape: bf16[48,128], index: 0, kind: input, shape index: {}]   ;;  %s1190_s1 = inlined_call_operand.vmem [shape: bf16[5,48,48], index: 1, kind: input, shape index: {}]   ;;  %s1191_s2 = inlined_call_operand.vmem [shape: f32[5,48,1], index: 2, kind: input, shape index: {}]   ;;  %s1192_s3 = inlined_call_operand.hbm [shape: f32[8,128], index: 3, kind: output, shape index: {}]  }
   0x1   :  { %v919_v0 = vld [vmem:[%s1189_s0] sm:$0xff]   ;;  %817 = vmatprep.subr.bf16.mxu0 %v961_v1  ;;  %907 = vmatprep.subr.bf16.mxu1 %v961_v1  ;;  %v920_v2 = vld [vmem:[%s1189_s0 + $0x8] sm:$0xff]   ;;  %v921_v4 = vld [vmem:[%s1189_s0 + $0x10] sm:$0xff]  }
   0x2   :  { %818 = vmatpush3.bf16.msra.mxu0 %v919_v0  ;;  %910 = vmatpush3.bf16.msra.mxu1 %v919_v0  ;;  %v28_v5 = vld [vmem:[%s1191_s2] sm:$0xff]  ;;  %v30_v6 = vld [vmem:[%s1191_s2 + $0x10] sm:$0xff]  ;;  %v29_v9 = vld [vmem:[%s1191_s2 + $0x8] sm:$0xff] }
   0x3   :  { %819 = vmatprep.subr.bf16.mxu0 %v961_v1  ;;  %908 = vmatprep.subr.bf16.mxu1 %v961_v1  ;;  %v922_v7 = vld [vmem:[%s1190_s1] sm:$0xff]   ;;  %v923_v8 = vld [vmem:[%s1190_s1 + $0x10] sm:$0xff]   ;;  %v31_v10 = vld [vmem:[%s1191_s2 + $0x18] sm:$0xff] }
   0x4   :  { %823 = vmatprep.mubr.msk.bf16.mxu0 %vm962_vm0, %v961_v1  ;;  %831 = vmatprep.mubr.msk.bf16.mxu1 %vm962_vm0, %v961_v1  ;;  %v32_v11 = vld [vmem:[%s1191_s2 + $0x20] sm:$0xff]  ;;  %v33_v12 = vld [vmem:[%s1191_s2 + $0x28] sm:$0xff]  ;;  %v721_v14 = vld [vmem:[%s1191_s2 + $0x30] sm:$0xff] }
   0x5   :  { %917 = vset.pattern.permute.xlu0 %v963_v3  ;;  %918 = vset.pattern.permute.xlu1 %v963_v3  ;;  %v924_v13 = vld [vmem:[%s1190_s1 + $0x8] sm:$0xff]   ;;  %v722_v15 = vld [vmem:[%s1191_s2 + $0x38] sm:$0xff]  ;;  %v723_v16 = vld [vmem:[%s1191_s2 + $0x40] sm:$0xff] }
   0x6   :  { %820 = vmatpush3.bf16.msra.mxu0 %v920_v2  ;;  %911 = vmatpush3.bf16.msra.mxu1 %v920_v2  ;;  %v724_v17 = vld [vmem:[%s1191_s2 + $0x48] sm:$0xff] }
   0x7   :  { %821 = vmatprep.subr.bf16.mxu0 %v961_v1  ;;  %909 = vmatprep.subr.bf16.mxu1 %v961_v1 }
   0x8   :  { %36 = vperm.xlu0 %917, %v28_v5   ;;  %46 = vperm.xlu1 %918, %v30_v6  }
   0xa   :  { %822 = vmatpush3.bf16.msra.mxu0 %v921_v4  ;;  %912 = vmatpush3.bf16.msra.mxu1 %v921_v4 }
   0xb   :  { %835 = vmatprep.subr.bf16.mxu1 %v961_v1  ;;  %853 = vmatprep.subr.bf16.mxu0 %v961_v1 }
   0xc   :  { %41 = vperm.xlu0 %917, %v29_v9   ;;  %51 = vperm.xlu1 %918, %v31_v10  }
   0xd   :  { %824 = vmatmul.mubr.msk.bf16.vlgmr.msra.gmra.mrb[0].mxu0 %vm97_vm1, %v922_v7  ;;  %832 = vmatmul.mubr.msk.bf16.vlgmr.msra.gmra.mrb[0].mxu1 %vm97_vm1, %v923_v8 }
   0xe   :  { %827 = vmatprep.mubr.msk.bf16.mxu0 %vm962_vm0, %v961_v1  ;;  %841 = vmatprep.mubr.msk.bf16.mxu1 %vm962_vm0, %v961_v1 }
  0x10   :  { %56 = vperm.xlu0 %917, %v32_v11   ;;  %61 = vperm.xlu1 %918, %v33_v12  }
  0x14   :  { %189 = vperm.xlu0 %917, %v721_v14   ;;  %194 = vperm.xlu1 %918, %v722_v15  }
  0x15   :  { %828 = vmatmul.mubr.msk.bf16.gmra.mrb[4].mxu0 %vm97_vm1, %v924_v13 }
  0x16   :  { %859 = vmatprep.mubr.msk.bf16.mxu0 %vm962_vm0, %v961_v1 }
  0x17   :  { %8 = vsyncpa [#allocation3], 0  ;;  %v725_v18 = vld [vmem:[%s1191_s2 + $0x50] sm:$0xff]  ;;  %v726_v19 = vld [vmem:[%s1191_s2 + $0x58] sm:$0xff]  ;;  %s964_s13 = smov [#allocation2]  }
  0x18   :  { %199 = vperm.xlu0 %917, %v723_v16   ;;  %204 = vperm.xlu1 %918, %v724_v17   ;;  %v739_v20 = vld [vmem:[%s1191_s2 + $0x60] sm:$0xff]  ;;  %v740_v21 = vld [vmem:[%s1191_s2 + $0x68] sm:$0xff]  ;;  %v741_v22 = vld [vmem:[%s1191_s2 + $0x70] sm:$0xff]  ;;  %s698_s14 = sshll.u32 %s964_s13, 4  ;;  %s699_s14 = int_to_ptr.vmem [resolvable:$true] %s698_s14 }
  0x19   :  { %v742_v23 = vld [vmem:[%s1191_s2 + $0x78] sm:$0xff]  ;;  %v743_v24 = vld [vmem:[%s1191_s2 + $0x80] sm:$0xff]  ;;  %v744_v25 = vld [vmem:[%s1191_s2 + $0x88] sm:$0xff]  ;;  %s937_s15 = scalar_lea.vmem %s699_s14, 128  ;;  %p942_p1 = scmp.lt.s32.totalorder %s699_s14, %s699_s14 }
  0x1a   :  { %v757_v26 = vld [vmem:[%s1191_s2 + $0x90] sm:$0xff]  ;;  %v758_v27 = vld [vmem:[%s1191_s2 + $0x98] sm:$0xff]  ;;  %v759_v28 = vld [vmem:[%s1191_s2 + $0xa0] sm:$0xff]  ;;  %p938_p0 = scmp.ne.s32.totalorder %s699_s14, %s937_s15  ;;  %p943_p2 = scmp.lt.s32.totalorder %s937_s15, %s937_s15 }
  0x1b   :  { %v760_v29 = vld [vmem:[%s1191_s2 + $0xa8] sm:$0xff]  ;;  %v761_v30 = vld [vmem:[%s1191_s2 + $0xb0] sm:$0xff]  ;;  %v762_v31 = vld [vmem:[%s1191_s2 + $0xb8] sm:$0xff] }
  0x1c   :  { %209 = vperm.xlu0 %917, %v725_v18   ;;  %214 = vperm.xlu1 %918, %v726_v19   ;;  %v775_v32 = vld [vmem:[%s1191_s2 + $0xc0] sm:$0xff]  ;;  %v925_v3 = vld [vmem:[%s1190_s1 + $0x18] sm:$0xff]   ;;  %v927_v5 = vld [vmem:[%s1190_s1 + $0x28] sm:$0xff]   ;;  %p944_p3 = por %p943_p2, %p942_p1 }
  0x1d   :  { %v926_v4 = vld [vmem:[%s1190_s1 + $0x20] sm:$0xff]  }
  0x1e   :  { %p945_p4 = pnand %p944_p3, %p938_p0 }
  0x20   :  { %323 = vperm.xlu0 %917, %v739_v20   ;;  %328 = vperm.xlu1 %918, %v740_v21  }
  0x24   :  { %333 = vperm.xlu0 %917, %v741_v22   ;;  %338 = vperm.xlu1 %918, %v742_v23  }
  0x28   :  { %343 = vperm.xlu0 %917, %v743_v24   ;;  %348 = vperm.xlu1 %918, %v744_v25  }
  0x2c   :  { %457 = vperm.xlu0 %917, %v757_v26   ;;  %462 = vperm.xlu1 %918, %v758_v27  }
  0x30   :  { %467 = vperm.xlu0 %917, %v759_v28   ;;  %472 = vperm.xlu1 %918, %v760_v29  }
  0x34   :  { %477 = vperm.xlu0 %917, %v761_v30   ;;  %482 = vperm.xlu1 %918, %v762_v31  }
  0x38   :  { %591 = vperm.xlu0 %917, %v775_v32  }
  0x87   :  { %v37_v33 = vpop.permute.xlu0 %36  ;;  %v47_v34 = vpop.permute.xlu1 %46 }
  0x8b   :  { %v42_v35 = vpop.permute.xlu0 %41  ;;  %v52_v36 = vpop.permute.xlu1 %51 }
  0x8f   :  { %v57_v37 = vpop.permute.xlu0 %56  ;;  %v62_v38 = vpop.permute.xlu1 %61 }
  0x93   :  { %v190_v6 = vpop.permute.xlu0 %189  ;;  %v195_v10 = vpop.permute.xlu1 %194 }
  0x97   :  { %v200_v17 = vpop.permute.xlu0 %199  ;;  %v205_v21 = vpop.permute.xlu1 %204 }
  0x9b   :  { %v210_v28 = vpop.permute.xlu0 %209  ;;  %v215_v32 = vpop.permute.xlu1 %214 }
  0xe0   :  { %v141_v39 = vpop.f32.mrb[0].mxu0  ;;  %v157_v40 = vpop.f32.mrb[0].mxu1 }
  0xe1   :  { %v142_v41 = vadd.f32 %v141_v39, %v37_v33  ;;  %v158_v42 = vadd.f32 %v157_v40, %v57_v37  ;;  %v825_v43 = vpop.f32.mrb[1].mxu0  ;;  %v833_v44 = vpop.f32.mrb[1].mxu1  ;;  %v928_v39 = vld [vmem:[%s1190_s1 + $0x30] sm:$0xff]   ;;  %v929_v40 = vld [vmem:[%s1190_s1 + $0x38] sm:$0xff]  }
  0xe2   :  { %v144_v45 = vpop.f32.mrb[2].mxu0  ;;  %v160_v46 = vpop.f32.mrb[2].mxu1 }
  0xe3   :  { %v168_v47 = vmax.f32 %v158_v42, 0.0  ;;  %v145_v48 = vadd.f32 %v144_v45, %v42_v35  ;;  %v161_v49 = vadd.f32 %v160_v46, %v62_v38  ;;  %v826_v50 = vpop.f32.mrb[3].mxu0  ;;  %v834_v51 = vpop.f32.mrb[3].mxu1  ;;  %v164_v52 = vmax.f32 %v142_v41, 0.0  ;;  %v930_v41 = vld [vmem:[%s1190_s1 + $0x40] sm:$0xff]  }
  0xe4   :  { %v324_v42 = vpop.permute.xlu0 %323  ;;  %v329_v46 = vpop.permute.xlu1 %328 }
  0xe5   :  { %v165_v53 = vmax.f32 %v145_v48, 0.0  ;;  %v169_v54 = vmax.f32 %v161_v49, 0.0 }
  0xe7   :  { %v170_v55 = vpack.c.bf16 %v165_v53, %v164_v52  ;;  %v172_v56 = vpack.c.bf16 %v169_v54, %v168_v47 }
  0xe8   :  { %v149_v57 = vpop.f32.mrb[4].mxu0  ;;  %v334_v53 = vpop.permute.xlu0 %333 }
  0xe9   :  { %v150_v58 = vadd.f32 %v149_v57, %v47_v34  ;;  %v829_v59 = vpop.f32.mrb[5].mxu0  ;;  %836 = vmatpush3.bf16.msra.mxu1 %v170_v55  ;;  %v339_v57 = vpop.permute.xlu1 %338 }
  0xea   :  { %v152_v60 = vpop.f32.mrb[6].mxu0  ;;  %837 = vmatprep.subr.bf16.mxu1 %v961_v1 }
  0xeb   :  { %v153_v61 = vadd.f32 %v152_v60, %v52_v36  ;;  %v830_v62 = vpop.f32.mrb[7].mxu0  ;;  %v166_v63 = vmax.f32 %v150_v58, 0.0 }
  0xed   :  { %v167_v0 = vmax.f32 %v153_v61, 0.0 }
  0xef   :  { %v171_v2 = vpack.c.bf16 %v167_v0, %v166_v63  ;;  %v344_v0 = vpop.permute.xlu0 %343 }
  0xf1   :  { %838 = vmatpush3.bf16.msra.mxu1 %v171_v2 }
  0xf2   :  { %839 = vmatprep.subr.bf16.mxu1 %v961_v1 }
  0xf5   :  { %840 = vmatpush3.bf16.msra.mxu1 %v172_v56 }
  0xf6   :  { %871 = vmatprep.subr.bf16.mxu1 %v961_v1 }
  0xf8   :  { %842 = vmatmul.mubr.msk.bf16.vlgmr.msra.gmra.mrb[4].mxu1 %vm97_vm1, %v925_v3 }
  0xf9   :  { %845 = vmatprep.mubr.msk.bf16.mxu1 %vm962_vm0, %v961_v1 }
 0x100   :  { %846 = vmatmul.mubr.msk.bf16.gmra.mrb[8].mxu1 %vm97_vm1, %v926_v4 }
 0x101   :  { %849 = vmatprep.mubr.msk.bf16.mxu1 %vm962_vm0, %v961_v1 }
 0x108   :  { %850 = vmatmul.mubr.msk.bf16.gmra.mrb[12].mxu1 %vm97_vm1, %v927_v5  ;;  %v349_v5 = vpop.permute.xlu1 %348 }
 0x109   :  { %877 = vmatprep.mubr.msk.bf16.mxu1 %vm962_vm0, %v961_v1 }
 0x1cb   :  { %v275_v7 = vpop.f32.mrb[4].mxu1 }
 0x1cc   :  { %v276_v8 = vadd.f32 %v275_v7, %v190_v6  ;;  %v843_v9 = vpop.f32.mrb[5].mxu1 }
 0x1cd   :  { %v278_v11 = vpop.f32.mrb[6].mxu1 }
 0x1ce   :  { %v279_v12 = vadd.f32 %v278_v11, %v195_v10  ;;  %v844_v13 = vpop.f32.mrb[7].mxu1  ;;  %v298_v14 = vmax.f32 %v276_v8, 0.0 }
 0x1cf   :  { %v932_v13 = vld [vmem:[%s1190_s1 + $0x50] sm:$0xff]  }
 0x1d0   :  { %v299_v15 = vmax.f32 %v279_v12, 0.0  ;;  %v931_v12 = vld [vmem:[%s1190_s1 + $0x48] sm:$0xff]  }
 0x1d2   :  { %v304_v16 = vpack.c.bf16 %v299_v15, %v298_v14  ;;  %v933_v14 = vld [vmem:[%s1190_s1 + $0x58] sm:$0xff]   ;;  %v458_v15 = vpop.permute.xlu0 %457 }
 0x1d3   :  { %v283_v18 = vpop.f32.mrb[8].mxu1 }
 0x1d4   :  { %v284_v19 = vadd.f32 %v283_v18, %v200_v17  ;;  %v847_v20 = vpop.f32.mrb[9].mxu1  ;;  %854 = vmatpush3.bf16.msra.mxu0 %v304_v16 }
 0x1d5   :  { %v286_v22 = vpop.f32.mrb[10].mxu1  ;;  %855 = vmatprep.subr.bf16.mxu0 %v961_v1 }
 0x1d6   :  { %v287_v23 = vadd.f32 %v286_v22, %v205_v21  ;;  %v848_v24 = vpop.f32.mrb[11].mxu1  ;;  %v300_v25 = vmax.f32 %v284_v19, 0.0  ;;  %v463_v19 = vpop.permute.xlu1 %462 }
 0x1d8   :  { %v301_v26 = vmax.f32 %v287_v23, 0.0 }
 0x1da   :  { %v305_v27 = vpack.c.bf16 %v301_v26, %v300_v25  ;;  %v468_v26 = vpop.permute.xlu0 %467 }
 0x1db   :  { %v291_v29 = vpop.f32.mrb[12].mxu1 }
 0x1dc   :  { %v292_v30 = vadd.f32 %v291_v29, %v210_v28  ;;  %v851_v31 = vpop.f32.mrb[13].mxu1  ;;  %856 = vmatpush3.bf16.msra.mxu0 %v305_v27 }
 0x1dd   :  { %v294_v33 = vpop.f32.mrb[14].mxu1  ;;  %857 = vmatprep.subr.bf16.mxu0 %v961_v1 }
 0x1de   :  { %v295_v34 = vadd.f32 %v294_v33, %v215_v32  ;;  %v852_v35 = vpop.f32.mrb[15].mxu1  ;;  %v302_v36 = vmax.f32 %v292_v30, 0.0  ;;  %v473_v30 = vpop.permute.xlu1 %472 }
 0x1e0   :  { %v303_v37 = vmax.f32 %v295_v34, 0.0 }
 0x1e2   :  { %v306_v38 = vpack.c.bf16 %v303_v37, %v302_v36  ;;  %v478_v37 = vpop.permute.xlu0 %477 }
 0x1e4   :  { %858 = vmatpush3.bf16.msra.mxu0 %v306_v38 }
 0x1e5   :  { %889 = vmatprep.subr.bf16.mxu0 %v961_v1 }
 0x1e7   :  { %860 = vmatmul.mubr.msk.bf16.vlgmr.msra.gmra.mrb[8].mxu0 %vm97_vm1, %v928_v39 }
 0x1e8   :  { %863 = vmatprep.mubr.msk.bf16.mxu0 %vm962_vm0, %v961_v1 }
 0x1ef   :  { %864 = vmatmul.mubr.msk.bf16.gmra.mrb[12].mxu0 %vm97_vm1, %v929_v40 }
 0x1f0   :  { %867 = vmatprep.mubr.msk.bf16.mxu0 %vm962_vm0, %v961_v1 }
 0x1f7   :  { %868 = vmatmul.mubr.msk.bf16.gmra.mrb[16].mxu0 %vm97_vm1, %v930_v41  ;;  %v483_v41 = vpop.permute.xlu1 %482 }
 0x1f8   :  { %895 = vmatprep.mubr.msk.bf16.mxu0 %vm962_vm0, %v961_v1 }
 0x2ba   :  { %v409_v43 = vpop.f32.mrb[8].mxu0 }
 0x2bb   :  { %v410_v44 = vadd.f32 %v409_v43, %v324_v42  ;;  %v861_v45 = vpop.f32.mrb[9].mxu0 }
 0x2bc   :  { %v412_v47 = vpop.f32.mrb[10].mxu0 }
 0x2bd   :  { %v413_v48 = vadd.f32 %v412_v47, %v329_v46  ;;  %v862_v49 = vpop.f32.mrb[11].mxu0  ;;  %v432_v50 = vmax.f32 %v410_v44, 0.0 }
 0x2be   :  { %v935_v49 = vld [vmem:[%s1190_s1 + $0x68] sm:$0xff]  }
 0x2bf   :  { %v433_v51 = vmax.f32 %v413_v48, 0.0  ;;  %v934_v48 = vld [vmem:[%s1190_s1 + $0x60] sm:$0xff]  }
 0x2c1   :  { %v438_v52 = vpack.c.bf16 %v433_v51, %v432_v50  ;;  %v936_v50 = vld [vmem:[%s1190_s1 + $0x70] sm:$0xff]   ;;  %v592_v51 = vpop.permute.xlu0 %591 }
 0x2c2   :  { %v417_v54 = vpop.f32.mrb[12].mxu0 }
 0x2c3   :  { %v418_v55 = vadd.f32 %v417_v54, %v334_v53  ;;  %v865_v56 = vpop.f32.mrb[13].mxu0  ;;  %872 = vmatpush3.bf16.msra.mxu1 %v438_v52 }
 0x2c4   :  { %v420_v58 = vpop.f32.mrb[14].mxu0  ;;  %873 = vmatprep.subr.bf16.mxu1 %v961_v1 }
 0x2c5   :  { %v421_v59 = vadd.f32 %v420_v58, %v339_v57  ;;  %v866_v60 = vpop.f32.mrb[15].mxu0  ;;  %v434_v61 = vmax.f32 %v418_v55, 0.0 }
 0x2c7   :  { %v435_v62 = vmax.f32 %v421_v59, 0.0 }
 0x2c9   :  { %v439_v63 = vpack.c.bf16 %v435_v62, %v434_v61 }
 0x2ca   :  { %v425_v2 = vpop.f32.mrb[16].mxu0 }
 0x2cb   :  { %v426_v3 = vadd.f32 %v425_v2, %v344_v0  ;;  %v869_v4 = vpop.f32.mrb[17].mxu0  ;;  %874 = vmatpush3.bf16.msra.mxu1 %v439_v63 }
 0x2cc   :  { %v428_v6 = vpop.f32.mrb[18].mxu0  ;;  %875 = vmatprep.subr.bf16.mxu1 %v961_v1 }
 0x2cd   :  { %v429_v7 = vadd.f32 %v428_v6, %v349_v5  ;;  %v870_v8 = vpop.f32.mrb[19].mxu0  ;;  %v436_v9 = vmax.f32 %v426_v3, 0.0 }
 0x2cf   :  { %v437_v10 = vmax.f32 %v429_v7, 0.0 }
 0x2d1   :  { %v440_v11 = vpack.c.bf16 %v437_v10, %v436_v9 }
 0x2d3   :  { %876 = vmatpush3.bf16.msra.mxu1 %v440_v11 }
 0x2d6   :  { %878 = vmatmul.mubr.msk.bf16.vlgmr.msra.gmra.mrb[16].mxu1 %vm97_vm1, %v931_v12 }
 0x2d7   :  { %881 = vmatprep.mubr.msk.bf16.mxu1 %vm962_vm0, %v961_v1 }
 0x2de   :  { %882 = vmatmul.mubr.msk.bf16.gmra.mrb[20].mxu1 %vm97_vm1, %v932_v13 }
 0x2df   :  { %885 = vmatprep.mubr.msk.bf16.mxu1 %vm962_vm0, %v961_v1 }
 0x2e6   :  { %886 = vmatmul.mubr.msk.bf16.gmra.mrb[24].mxu1 %vm97_vm1, %v933_v14 }
 0x3a9   :  { %v543_v16 = vpop.f32.mrb[16].mxu1 }
 0x3aa   :  { %v544_v17 = vadd.f32 %v543_v16, %v458_v15  ;;  %v879_v18 = vpop.f32.mrb[17].mxu1 }
 0x3ab   :  { %v546_v20 = vpop.f32.mrb[18].mxu1 }
 0x3ac   :  { %v547_v21 = vadd.f32 %v546_v20, %v463_v19  ;;  %v880_v22 = vpop.f32.mrb[19].mxu1  ;;  %v566_v23 = vmax.f32 %v544_v17, 0.0 }
 0x3ae   :  { %v567_v24 = vmax.f32 %v547_v21, 0.0 }
 0x3b0   :  { %v572_v25 = vpack.c.bf16 %v567_v24, %v566_v23 }
 0x3b1   :  { %v551_v27 = vpop.f32.mrb[20].mxu1 }
 0x3b2   :  { %v552_v28 = vadd.f32 %v551_v27, %v468_v26  ;;  %v883_v29 = vpop.f32.mrb[21].mxu1  ;;  %890 = vmatpush3.bf16.msra.mxu0 %v572_v25 }
 0x3b3   :  { %v554_v31 = vpop.f32.mrb[22].mxu1  ;;  %891 = vmatprep.subr.bf16.mxu0 %v961_v1 }
 0x3b4   :  { %v555_v32 = vadd.f32 %v554_v31, %v473_v30  ;;  %v884_v33 = vpop.f32.mrb[23].mxu1  ;;  %v568_v34 = vmax.f32 %v552_v28, 0.0 }
 0x3b6   :  { %v569_v35 = vmax.f32 %v555_v32, 0.0 }
 0x3b8   :  { %v573_v36 = vpack.c.bf16 %v569_v35, %v568_v34 }
 0x3b9   :  { %v559_v38 = vpop.f32.mrb[24].mxu1 }
 0x3ba   :  { %v560_v39 = vadd.f32 %v559_v38, %v478_v37  ;;  %v887_v40 = vpop.f32.mrb[25].mxu1  ;;  %892 = vmatpush3.bf16.msra.mxu0 %v573_v36 }
 0x3bb   :  { %v562_v42 = vpop.f32.mrb[26].mxu1  ;;  %893 = vmatprep.subr.bf16.mxu0 %v961_v1 }
 0x3bc   :  { %v563_v43 = vadd.f32 %v562_v42, %v483_v41  ;;  %v888_v44 = vpop.f32.mrb[27].mxu1  ;;  %v570_v45 = vmax.f32 %v560_v39, 0.0 }
 0x3be   :  { %v571_v46 = vmax.f32 %v563_v43, 0.0 }
 0x3c0   :  { %v574_v47 = vpack.c.bf16 %v571_v46, %v570_v45 }
 0x3c2   :  { %894 = vmatpush3.bf16.msra.mxu0 %v574_v47 }
 0x3c5   :  { %896 = vmatmul.mubr.msk.bf16.vlgmr.msra.gmra.mrb[20].mxu0 %vm97_vm1, %v934_v48 }
 0x3c6   :  { %899 = vmatprep.mubr.msk.bf16.mxu0 %vm962_vm0, %v961_v1 }
 0x3cd   :  { %900 = vmatmul.mubr.msk.bf16.gmra.mrb[24].mxu0 %vm97_vm1, %v935_v49 }
 0x3ce   :  { %903 = vmatprep.mubr.msk.bf16.mxu0 %vm962_vm0, %v961_v1 }
 0x3d5   :  { %904 = vmatmul.mubr.msk.bf16.gmra.mrb[28].mxu0 %vm97_vm1, %v936_v50 }
 0x498   :  { %v672_v52 = vpop.f32.mrb[20].mxu0 }
 0x499   :  { %v673_v53 = vadd.f32 %v672_v52, %v592_v51  ;;  %v897_v54 = vpop.f32.mrb[21].mxu0 }
 0x49a   :  { %v675_v55 = vpop.f32.mrb[22].mxu0 }
 0x49b   :  { %v690_v56 = vmax.f32 %v673_v53, 0.0  ;;  %v898_v57 = vpop.f32.mrb[23].mxu0 }
 0x49d   :  { %691 = vst [vmem:[#allocation2] sm:$0xff] %v690_v56 }
 0x49e   :  { %948 = shalt.err (!%p945_p4)
}
 0x49f   :  { %s949_s17 = scalar_lea.hbm %s1192_s3, 128 }
 0x4a0   :  { %p950_p5 = scmp.ne.s32.totalorder %s1192_s3, %s949_s17  ;;  %p953_p6 = scmp.lt.u32.totalorder %s949_s17, %s1192_s3 }
 0x4a2   :  { %p955_p7 = pnand %p953_p6, %p950_p5 }
 0x4a4   :  { %958 = shalt.err (!%p955_p7)
}
 0x4a5   :  { %701 = dma.vmem_to_hbm [thread:$0]  %s699_s14, 128, %s1192_s3, [#allocation3]   ;;  %v679_v1 = vpop.f32.mrb[24].mxu0 }
 0x4a6   :  { %v901_v58 = vpop.f32.mrb[25].mxu0 }
 0x4a7   :  { %v681_v59 = vpop.f32.mrb[26].mxu0 }
 0x4a8   :  { %v902_v60 = vpop.f32.mrb[27].mxu0 }
 0x4a9   :  { %v685_v61 = vpop.f32.mrb[28].mxu0 }
 0x4aa   :  { %v905_v62 = vpop.f32.mrb[29].mxu0 }
 0x4ab   :  { %v687_v63 = vpop.f32.mrb[30].mxu0 }
 0x4ac   :  { %v906_v0 = vpop.f32.mrb[31].mxu0 }
 0x4ad   :  { %959 = dma.done.wait [#allocation3], 128  }
 0x4ae   :  { %960 = vsyncadd [#allocation3], 4294967168 }
 0x4af   :  { %705 = vsyncpa [#allocation3], 1 }

</bundles_post_ra>
